<compile_context>
chip_gen: v7x
topology: tpu7x:2x2x1
jax: 0.10.0
libtpu: 0.0.40
codegen_flags: <defaults>
</compile_context>

<pallas_src>
import math

import jax
import jax.numpy as jnp
from jax import lax
from jax.experimental import pallas as pl
from jax.experimental.pallas import tpu as pltpu


_LANE = 128
_VMEM_LIMIT_BYTES = 32 * 1024 * 1024           # scoped VMEM we request (fits v5e/v6e/v7x)
_VMEM_BUDGET = (3 * _VMEM_LIMIT_BYTES) // 4    # ~25% headroom for compiler scratch
_MAX_TB = 8192                                 # diminishing returns beyond this


def _round_up(x, m):
    return ((x + m - 1) // m) * m


def _cdiv(a, b):
    return -(-a // b)


def _max_batch_tile(nin, nh_p, nout_p, x_itemsize):
    """Largest batch tile (multiple of 128) whose VMEM footprint fits the budget."""
    nin_l = _round_up(nin, _LANE)              # x tile is lane-padded to 128 in VMEM
    # VMEM-resident weights/biases (single-buffered), (sublane, lane)-padded.
    resident = (_round_up(nin, 16) * nh_p * 2          # w1   (bf16)
                + 8 * nh_p * 4                         # b1   (f32)
                + _round_up(nout_p, 16) * nh_p * 2     # w2^T (bf16)
                + _round_up(nout_p, 8) * _LANE * 4)    # b2   (f32)
    # Per-batch-row bytes: double-buffered x tile, double-buffered (transposed) output
    # tile, plus in-kernel intermediates (h in f32, bf16 copies of x and h).
    per_row = (2 * nin_l * x_itemsize
               + 2 * _round_up(nout_p, 8) * 4
               + nh_p * 4 + nh_p * 2
               + nin_l * 2)
    avail = max(_VMEM_BUDGET - resident, per_row * _LANE)
    return min(_MAX_TB, max(_LANE, (avail // per_row) // _LANE * _LANE))


def _mlp2_kernel(x_ref, w1_ref, b1_ref, w2t_ref, b2_ref, o_ref):
    # Per-grid-step shapes:
    #   x_ref:   (tb, nin)       x.dtype  (streamed batch tile, double-buffered)
    #   w1_ref:  (nin, nh_p)     bf16     (resident, single-buffered)
    #   b1_ref:  (1, nh_p)       f32      (resident)
    #   w2t_ref: (nout_p, nh_p)  bf16     (resident, torch (out, in) layout)
    #   b2_ref:  (nout_p, 1)     f32      (resident)
    #   o_ref:   (nout_p, tb)    f32      (lane-dense transposed output)
    x = x_ref[...].astype(jnp.bfloat16)                           # bf16 MXU operand
    h = jnp.dot(x, w1_ref[...], preferred_element_type=jnp.float32)
    h = jnp.maximum(h + b1_ref[...], 0.0)                         # bias + ReLU in f32 (VPU)
    # Layer 2 as an A @ B^T contraction (both operands contract on their last dim):
    # MXU-native (like q @ k^T), no per-step XLU transpose of the big h tile, and the
    # (nout_p, tb) result is lane-dense along the batch dim.
    yt = lax.dot_general(
        w2t_ref[...], h.astype(jnp.bfloat16),
        dimension_numbers=(((1,), (1,)), ((), ())),
        preferred_element_type=jnp.float32)
    o_ref[...] = (yt + b2_ref[...]).astype(o_ref.dtype)


def mlp2_forward(x, w1, b1, w2, b2):
    """MLP2Layers forward.

    x : (B, nin)
    w1: (nin, nh), b1: (nh,)     -- layer 1 (stored as (in, out))
    w2: (nh, nout), b2: (nout,)  -- layer 2 (stored as (in, out))
    Returns (B,) if nout == 1 else (B, nout)   (torch `.squeeze(-1)` semantics).
    """
    B, nin = x.shape
    nh = w1.shape[1]
    nout = w2.shape[1]

    # ---- one-time weight padding / dtype prep (outside the hot x stream) -----------
    nh_p = _round_up(nh, _LANE)        # lane-align the hidden dim
    nout_p = _round_up(nout, 8)        # sublane-align the (transposed) output dim
    w1_p = jnp.pad(w1, ((0, 0), (0, nh_p - nh))).astype(jnp.bfloat16)
    b1_p = jnp.pad(b1, (0, nh_p - nh)).reshape(1, nh_p).astype(jnp.float32)
    w2t_p = jnp.pad(w2.T, ((0, nout_p - nout), (0, nh_p - nh))).astype(jnp.bfloat16)
    b2_p = jnp.pad(b2, (0, nout_p - nout)).reshape(nout_p, 1).astype(jnp.float32)

    # ---- batch tiling: VMEM-budgeted tile, >= 2 balanced steps for large batches ----
    x_itemsize = x.dtype.itemsize
    tb_cap = _max_batch_tile(nin, nh_p, nout_p, x_itemsize)
    b8 = _round_up(B, 8)
    if b8 <= min(256, tb_cap):
        tb = b8                                    # tiny batch: one full-extent block
    else:
        # Balance the tiles over >= 2 steps (v7x has 2 TCs) and keep tb a multiple of
        # 128 so the output block stays lane-dense / unmasked and the x block is legal.
        n_steps = max(2, _cdiv(B, tb_cap))
        tb = _round_up(_cdiv(B, n_steps), _LANE)
    grid_b = _cdiv(B, tb)
    b_pad = grid_b * tb
    # x stays in its native dtype (the kernel casts to bf16 for the MXU).  The pad copy
    # only triggers when tb does not divide B.
    x_p = x if b_pad == B else jnp.pad(x, ((0, b_pad - B), (0, 0)))

    bytes_accessed = (b_pad * nin * x_itemsize + w1_p.size * 2 + b1_p.size * 4
                      + w2t_p.size * 2 + b2_p.size * 4 + nout_p * b_pad * 4)

    def resident(shape):
        # Constant block index -> stays VMEM-resident across all grid steps; single
        # buffer (the block never changes, double-buffering would only waste VMEM).
        return pl.BlockSpec(shape, lambda i: (0,) * len(shape),
                            pipeline_mode=pl.Buffered(1))

    out_t = pl.pallas_call(
        _mlp2_kernel,
        out_shape=jax.ShapeDtypeStruct((nout_p, b_pad), jnp.float32),
        grid=(grid_b,),
        in_specs=[
            pl.BlockSpec((tb, nin), lambda i: (i, 0)),   # x: streamed over the batch
            resident((nin, nh_p)),                       # w1
            resident((1, nh_p)),                         # b1
            resident((nout_p, nh_p)),                    # w2^T
            resident((nout_p, 1)),                       # b2
        ],
        out_specs=pl.BlockSpec((nout_p, tb), lambda i: (0, i)),
        compiler_params=pltpu.CompilerParams(
            dimension_semantics=("parallel",),     # shard batch tiles over v7x's 2 TCs
            vmem_limit_bytes=_VMEM_LIMIT_BYTES,    # v5e scoped default is only 16 MiB
        ),
        cost_estimate=pl.CostEstimate(
            flops=2 * b_pad * (nin * nh_p + nh_p * nout_p),
            transcendentals=0,
            bytes_accessed=bytes_accessed,
        ),
    )(x_p, w1_p, b1_p, w2t_p, b2_p)

    y = out_t[:nout, :B].T                 # (B, nout); tiny transpose for typical nout
    if nout == 1:
        y = y.reshape(B)                   # torch .squeeze(-1)
    return y.astype(x.dtype)


def init_params(key, nin, nh, nout, dtype=jnp.float32):
    """Mirror torch.nn.Linear default init; weights stored as (in, out)."""
    k1, k2, k3, k4 = jax.random.split(key, 4)
    bound1 = 1.0 / math.sqrt(nin)
    bound2 = 1.0 / math.sqrt(nh)
    w1 = jax.random.uniform(k1, (nin, nh), dtype, -bound1, bound1)
    b1 = jax.random.uniform(k2, (nh,), dtype, -bound1, bound1)
    w2 = jax.random.uniform(k3, (nh, nout), dtype, -bound2, bound2)
    b2 = jax.random.uniform(k4, (nout,), dtype, -bound2, bound2)
    return w1, b1, w2, b2


if __name__ == "__main__":
    key = jax.random.PRNGKey(0)
    kx, kp = jax.random.split(key)

    B, nin, nh, nout = 8, 16, 32, 1
    x = jax.random.normal(kx, (B, nin), jnp.float32)
    w1, b1, w2, b2 = init_params(kp, nin, nh, nout)

    y = mlp2_forward(x, w1, b1, w2, b2)
    y = jax.block_until_ready(y)
    assert y.shape == (B,), y.shape

    # Reference 1: exact f32 semantics (loose tolerance: kernel uses bf16 MXU operands).
    ref_f32 = (jnp.maximum(x @ w1 + b1, 0.0) @ w2 + b2).reshape(B)
    assert jnp.allclose(y, ref_f32, atol=5e-2, rtol=5e-2), (y, ref_f32)

    # Reference 2: same bf16-operand / f32-accumulate math in pure JAX (tight tolerance).
    h_ref = jnp.maximum(
        jnp.dot(x.astype(jnp.bfloat16), w1.astype(jnp.bfloat16),
                preferred_element_type=jnp.float32) + b1, 0.0)
    ref_bf16 = (jnp.dot(h_ref.astype(jnp.bfloat16), w2.astype(jnp.bfloat16),
                        preferred_element_type=jnp.float32) + b2).reshape(B)
    assert jnp.allclose(y, ref_bf16, atol=2e-3, rtol=2e-3), (y, ref_bf16)

    print("KERNEL_OK")
</pallas_src>

<mosaic_0001>
module attributes {stable_mosaic.version = 11 : i64} {
  func.func @_mlp2_kernel(%arg0: i32, %arg1: memref<8x16xf32, #tpu.memory_space<vmem>>, %arg2: memref<16x128xbf16, #tpu.memory_space<vmem>>, %arg3: memref<1x128xf32, #tpu.memory_space<vmem>>, %arg4: memref<8x128xbf16, #tpu.memory_space<vmem>>, %arg5: memref<8x1xf32, #tpu.memory_space<vmem>>, %arg6: memref<8x8xf32, #tpu.memory_space<vmem>>) attributes {dimension_semantics = [#tpu.dimension_semantics<parallel>], iteration_bounds = array<i64: 1>, scalar_prefetch = 0 : i64, scratch_operands = 0 : i64, tpu.core_type = #tpu.core_type<tc>, window_params = [{transform_indices = @transform_0, window_bounds = array<i64: 8, 16>}, {pipeline_mode = #tpu.pipeline_mode<synchronous>, transform_indices = @transform_1, window_bounds = array<i64: 16, 128>}, {pipeline_mode = #tpu.pipeline_mode<synchronous>, transform_indices = @transform_2, window_bounds = array<i64: 1, 128>}, {pipeline_mode = #tpu.pipeline_mode<synchronous>, transform_indices = @transform_3, window_bounds = array<i64: 8, 128>}, {pipeline_mode = #tpu.pipeline_mode<synchronous>, transform_indices = @transform_4, window_bounds = array<i64: 8, 1>}, {transform_indices = @transform_5, window_bounds = array<i64: 8, 8>}]} {
    %c0 = arith.constant 0 : index
    %c0_0 = arith.constant 0 : index
    %0 = vector.load %arg1[%c0, %c0_0] : memref<8x16xf32, #tpu.memory_space<vmem>>, vector<8x16xf32>
    %1 = arith.truncf %0 : vector<8x16xf32> to vector<8x16xbf16>
    %c0_1 = arith.constant 0 : index
    %c0_2 = arith.constant 0 : index
    %2 = vector.load %arg2[%c0_1, %c0_2] : memref<16x128xbf16, #tpu.memory_space<vmem>>, vector<16x128xbf16>
    %cst = arith.constant dense<0.000000e+00> : vector<8x128xf32>
    %3 = tpu.matmul %1, %2, %cst {dimension_numbers = #tpu.dot_dimension_numbers<[1], [0], [0], [1], [0, 0, 1, 1], [], []>} : vector<8x16xbf16>, vector<16x128xbf16>, vector<8x128xf32> -> vector<8x128xf32>
    %c0_3 = arith.constant 0 : index
    %c0_4 = arith.constant 0 : index
    %4 = vector.load %arg3[%c0_3, %c0_4] : memref<1x128xf32, #tpu.memory_space<vmem>>, vector<1x128xf32>
    %5 = vector.broadcast %4 : vector<1x128xf32> to vector<8x128xf32>
    %6 = arith.addf %3, %5 : vector<8x128xf32>
    %cst_5 = arith.constant 0.000000e+00 : f32
    %7 = vector.broadcast %cst_5 : f32 to vector<8x128xf32>
    %8 = arith.maximumf %6, %7 : vector<8x128xf32>
    %c0_6 = arith.constant 0 : index
    %c0_7 = arith.constant 0 : index
    %9 = vector.load %arg4[%c0_6, %c0_7] : memref<8x128xbf16, #tpu.memory_space<vmem>>, vector<8x128xbf16>
    %10 = arith.truncf %8 : vector<8x128xf32> to vector<8x128xbf16>
    %cst_8 = arith.constant dense<0.000000e+00> : vector<8x8xf32>
    %11 = tpu.matmul %9, %10, %cst_8 {dimension_numbers = #tpu.dot_dimension_numbers<[1], [1], [0], [0], [0, 0, 1, 0], [], []>} : vector<8x128xbf16>, vector<8x128xbf16>, vector<8x8xf32> -> vector<8x8xf32>
    %c0_9 = arith.constant 0 : index
    %c0_10 = arith.constant 0 : index
    %12 = vector.load %arg5[%c0_9, %c0_10] : memref<8x1xf32, #tpu.memory_space<vmem>>, vector<8x1xf32>
    %13 = vector.broadcast %12 : vector<8x1xf32> to vector<8x8xf32>
    %14 = arith.addf %11, %13 : vector<8x8xf32>
    %c0_11 = arith.constant 0 : index
    %c0_12 = arith.constant 0 : index
    %15 = vector.load %arg6[%c0_11, %c0_12] : memref<8x8xf32, #tpu.memory_space<vmem>>, vector<8x8xf32>
    tpu.vector_store %arg6[%c0_11, %c0_12], %14 {strides = array<i32>} : memref<8x8xf32, #tpu.memory_space<vmem>>, vector<8x8xf32>,
    return
  }
  func.func @transform_0(%arg0: i32) -> (i32, i32) {
    %c0_i32 = arith.constant 0 : i32
    %c0_i32_0 = arith.constant 0 : i32
    return %arg0, %c0_i32 : i32, i32
  }
  func.func @transform_1(%arg0: i32) -> (i32, i32) {
    %c0_i32 = arith.constant 0 : i32
    %c0_i32_0 = arith.constant 0 : i32
    %c0_i32_1 = arith.constant 0 : i32
    return %c0_i32, %c0_i32_0 : i32, i32
  }
  func.func @transform_2(%arg0: i32) -> (i32, i32) {
    %c0_i32 = arith.constant 0 : i32
    %c0_i32_0 = arith.constant 0 : i32
    %c0_i32_1 = arith.constant 0 : i32
    return %c0_i32, %c0_i32_0 : i32, i32
  }
  func.func @transform_3(%arg0: i32) -> (i32, i32) {
    %c0_i32 = arith.constant 0 : i32
    %c0_i32_0 = arith.constant 0 : i32
    %c0_i32_1 = arith.constant 0 : i32
    return %c0_i32, %c0_i32_0 : i32, i32
  }
  func.func @transform_4(%arg0: i32) -> (i32, i32) {
    %c0_i32 = arith.constant 0 : i32
    %c0_i32_0 = arith.constant 0 : i32
    %c0_i32_1 = arith.constant 0 : i32
    return %c0_i32, %c0_i32_0 : i32, i32
  }
  func.func @transform_5(%arg0: i32) -> (i32, i32) {
    %c0_i32 = arith.constant 0 : i32
    %c0_i32_0 = arith.constant 0 : i32
    return %c0_i32, %arg0 : i32, i32
  }
}

</mosaic_0001>

<bundles_post_ra>
// kernel: tpu_custom_call.1
= control target key start
LH: loop header
LB: loop body
LE: loop exit
PB: predicated region body
PF: predicated region fallthrough
CT: control target
= control target key end

     0   :  { %10 = vsyncpa [#allocation3], 0  ;;  %s312_s0 = inlined_call_operand.vmem [shape: f32[8,16], index: 0, kind: input, shape index: {}]   ;;  %s313_s1 = inlined_call_operand.hbm [shape: bf16[16,128], index: 1, kind: input, shape index: {}]   ;;  %s314_s2 = inlined_call_operand.vmem [shape: f32[1,128], index: 2, kind: input, shape index: {}]   ;;  %s315_s3 = inlined_call_operand.vmem [shape: bf16[8,128], index: 3, kind: input, shape index: {}]   ;;  %s316_s4 = inlined_call_operand.vmem [shape: f32[8,1], index: 4, kind: input, shape index: {}]   ;;  %s317_s5 = inlined_call_operand.hbm [shape: f32[8,8], index: 5, kind: output, shape index: {}]  }
   0x1   :  { %11 = vsyncpa [#allocation4], 0  ;;  %s239_s18 = smov [#allocation2]   ;;  %s191_s22 = scalar_lea.hbm %s313_s1, 128 }
   0x2   :  { %s19_s19 = sshll.u32 %s239_s18, 4  ;;  %p192_p0 = scmp.ne.s32.totalorder %s313_s1, %s191_s22  ;;  %s20_s19 = int_to_ptr.vmem [resolvable:$true] %s19_s19 }
   0x3   :  { %p195_p1 = scmp.lt.u32.totalorder %s191_s22, %s313_s1 }
   0x5   :  { %p197_p2 = pnand %p195_p1, %p192_p0 }
   0x7   :  { %200 = shalt.err (!%p197_p2)
}
   0x8   :  { %s201_s27 = scalar_lea.vmem %s20_s19, 128  ;;  %p206_p4 = scmp.lt.s32.totalorder %s20_s19, %s20_s19 }
   0x9   :  { %p202_p3 = scmp.ne.s32.totalorder %s20_s19, %s201_s27  ;;  %p207_p5 = scmp.lt.s32.totalorder %s201_s27, %s201_s27 }
   0xb   :  { %p208_p6 = por %p207_p5, %p206_p4 }
   0xd   :  { %p209_p7 = pnand %p208_p6, %p202_p3 }
   0xf   :  { %212 = shalt.err (!%p209_p7)
}
  0x10   :  { %s240_s28 = smov 64   ;;  %s241_s29 = smov 4  }
  0x11   :  { %25 = dma.hbm_to_vmem [thread:$0]  %s313_s1, 128, %s20_s19, [#allocation3], %s240_s28, %s240_s28, %s241_s29  }
  0x12   :  { %235 = dma.done.wait [#allocation3], 128  }
  0x13   :  { %236 = vsyncadd [#allocation3], 4294967168  ;;  %v242_v0 = vmov 0.0   ;;  %vm243_vm0 = vmmov 0   ;;  %v190_v1 = vld [vmem:[#allocation2] sm:$0xff]   ;;  %vm53_vm1 = vcmask 130048  }
  0x14   :  { %170 = vmatprep.subr.bf16.mxu0 %v242_v0  ;;  %172 = vmatprep.mubr.msk.bf16.mxu0 %vm243_vm0, %v242_v0  ;;  %v36_v2 = vld [vmem:[%s312_s0] sm:$0xff]  ;;  %v244_v5 = vmov 0   ;;  %vm146_vm2 = vcmask 64512  }
  0x15   :  { %176 = vmatprep.subr.bf16.mxu1 %v242_v0  ;;  %178 = vmatprep.mubr.msk.bf16.mxu1 %vm243_vm0, %v242_v0  ;;  %v37_v3 = vpack.c.bf16 %v36_v2, %v36_v2  ;;  %v100_v4 = vld [vmem:[%s316_s4] sm:$0xff]  ;;  %s245_s4 = smov [#allocation5]  }
  0x16   :  { %171 = vmatpush3.bf16.msra.mxu0 %v190_v1  ;;  %189 = vset.pattern.permute.xlu0 %v244_v5  ;;  %v163_v6 = vld [vmem:[%s314_s2] ss:$0 sm:$0xff]  ;;  %s154_s13 = sshll.u32 %s245_s4, 4  ;;  %s155_s13 = int_to_ptr.vmem [resolvable:$true] %s154_s13 }
  0x17   :  { %103 = vperm.xlu0 %189, %v100_v4   ;;  %v98_v14 = vld [vmem:[%s315_s3] sm:$0xf]  ;;  %s213_s2 = scalar_lea.vmem %s155_s13, 128  ;;  %p218_p9 = scmp.lt.s32.totalorder %s155_s13, %s155_s13 }
  0x18   :  { %p214_p8 = scmp.ne.s32.totalorder %s155_s13, %s213_s2  ;;  %p219_p10 = scmp.lt.s32.totalorder %s213_s2, %s213_s2 }
  0x19   :  { %173 = vmatmul.mubr.msk.bf16.vlgmr.msra.gmra.mrb[0].mxu0 %vm53_vm1, %v37_v3 }
  0x1a   :  { %p220_p11 = por %p219_p10, %p218_p9 }
  0x1c   :  { %p221_p12 = pnand %p220_p11, %p214_p8 }
  0x96   :  { %v104_v15 = vpop.permute.xlu0 %103 }
  0xec   :  { %v91_v7 = vpop.f32.mrb[0].mxu0 }
  0xed   :  { %v92_v8 = vadd.f32 %v163_v6, %v91_v7  ;;  %v174_v9 = vpop.f32.mrb[1].mxu0 }
  0xee   :  { %v94_v10 = vpop.f32.mrb[2].mxu0 }
  0xef   :  { %v97_v11 = vmax.f32 %v92_v8, 0.0  ;;  %v175_v12 = vpop.f32.mrb[3].mxu0 }
  0xf1   :  { %v99_v13 = vpack.c.bf16 %v97_v11, %v97_v11 }
  0xf3   :  { %177 = vmatpush3.bf16.xpose.msra.mxu1 %v99_v13 }
  0xfa   :  { %179 = vmatmul.mubr.bf16.vlgmr.msra.gmra.mrb[0].mxu1 %v98_v14 }
 0x1cd   :  { %v140_v16 = vpop.f32.mrb[0].mxu1 }
 0x1ce   :  { %v141_v17 = vadd.f32 %v140_v16, %v104_v15  ;;  %v180_v18 = vpop.f32.mrb[1].mxu1 }
 0x1cf   :  { %v143_v19 = vpop.f32.mrb[2].mxu1 }
 0x1d0   :  { %v181_v20 = vpop.f32.mrb[3].mxu1  ;;  %147 = vst.msk [vmem:[#allocation5] sm:$0xff] %vm146_vm2, %v141_v17 }
 0x1d1   :  { %224 = shalt.err (!%p221_p12)
}
 0x1d2   :  { %s225_s15 = scalar_lea.hbm %s317_s5, 128 }
 0x1d3   :  { %p226_p13 = scmp.ne.s32.totalorder %s317_s5, %s225_s15  ;;  %p229_p0 = scmp.lt.u32.totalorder %s225_s15, %s317_s5 }
 0x1d5   :  { %p231_p1 = pnand %p229_p0, %p226_p13 }
 0x1d7   :  { %234 = shalt.err (!%p231_p1)
}
 0x1d8   :  { %157 = dma.vmem_to_hbm [thread:$0]  %s155_s13, 128, %s317_s5, [#allocation4]  }
 0x1d9   :  { %237 = dma.done.wait [#allocation4], 128  }
 0x1da   :  { %238 = vsyncadd [#allocation4], 4294967168 }
 0x1db   :  { %161 = vsyncpa [#allocation3], 1 }
 0x1dc   :  { %162 = vsyncpa [#allocation4], 1 }

</bundles_post_ra>
